<compile_context>
chip_gen: v6e
topology: v6e:2x2x1
jax: 0.10.0
libtpu: 0.0.40
codegen_flags: <defaults>
</compile_context>

<pallas_src>
import jax
import jax.numpy as jnp
from jax.experimental import pallas as pl
from jax.experimental.pallas import tpu as pltpu


def _round_up(x, m):
    return ((x + m - 1) // m) * m


def _inverse_model_kernel(s_ref, ns_ref, w1a_ref, w1b_ref, b1_ref,
                          w2_ref, b2_ref, out_ref):
    # Layer 1: concat(state, next) @ w1  ==  state @ w1[:S] + next @ w1[S:]
    h = jnp.dot(s_ref[...], w1a_ref[...], preferred_element_type=jnp.float32)
    h = h + jnp.dot(ns_ref[...], w1b_ref[...], preferred_element_type=jnp.float32)
    h = jnp.maximum(h + b1_ref[...], 0.0)          # bias + ReLU in f32 (v5e VPU path)
    # Layer 2: bf16 operands, f32 accumulate, lane-dense padded output.
    o = jnp.dot(h.astype(jnp.bfloat16), w2_ref[...],
                preferred_element_type=jnp.float32)
    o = o + b2_ref[...]
    out_ref[...] = o.astype(out_ref.dtype)          # bf16 unmasked vst


def inverse_model_forward(state, next_state, w1, b1, w2, b2, *, tile_b=1024):
    """state, next_state: (B, S); w1: (2S, H); b1: (H,); w2: (H, A); b2: (A,)."""
    B, S = state.shape
    H = w1.shape[1]
    A = w2.shape[1]

    # ---- tile / grid sizing -------------------------------------------------
    # bf16 activations pack (16,128): keep tiles multiples of 16. Pick the
    # number of steps so the padded fraction stays small, and force >=2 steps
    # when possible so the "parallel" axis shards across v7x's two TCs.
    B16 = _round_up(B, 16)
    max_tile = _round_up(max(16, min(tile_b, B16)), 16)
    n_steps = pl.cdiv(B16, max_tile)
    if n_steps == 1 and B16 >= 32:
        n_steps = 2
    tb = _round_up(pl.cdiv(B16, n_steps), 16)
    n_steps = pl.cdiv(B16, tb)
    B_pad = tb * n_steps

    # ---- operand prep (cast to bf16 BEFORE padding to halve copy bytes) -----
    A_pad = max(128, _round_up(A, 128))

    state_bf = state.astype(jnp.bfloat16)
    next_bf = next_state.astype(jnp.bfloat16)
    if B_pad != B:
        pad = ((0, B_pad - B), (0, 0))
        state_bf = jnp.pad(state_bf, pad)
        next_bf = jnp.pad(next_bf, pad)

    w1_bf = w1.astype(jnp.bfloat16)
    w1a = w1_bf[:S, :]                               # (S, H)
    w1b = w1_bf[S:, :]                               # (S, H)
    w2_p = jnp.zeros((H, A_pad), jnp.bfloat16).at[:, :A].set(w2.astype(jnp.bfloat16))
    b1_f32 = b1.reshape(1, H).astype(jnp.float32)
    b2_f32 = jnp.zeros((1, A_pad), jnp.float32).at[0, :A].set(b2.astype(jnp.float32))

    out = pl.pallas_call(
        _inverse_model_kernel,
        out_shape=jax.ShapeDtypeStruct((B_pad, A_pad), jnp.bfloat16),
        grid=(n_steps,),
        in_specs=[
            # Activations: blocked over the batch axis.
            pl.BlockSpec((tb, S), lambda i: (i, 0)),
            pl.BlockSpec((tb, S), lambda i: (i, 0)),
            # Weights / biases: constant block index -> VMEM-resident.
            pl.BlockSpec((S, H), lambda i: (0, 0)),
            pl.BlockSpec((S, H), lambda i: (0, 0)),
            pl.BlockSpec((1, H), lambda i: (0, 0)),
            pl.BlockSpec((H, A_pad), lambda i: (0, 0)),
            pl.BlockSpec((1, A_pad), lambda i: (0, 0)),
        ],
        out_specs=pl.BlockSpec((tb, A_pad), lambda i: (i, 0)),
        compiler_params=pltpu.CompilerParams(
            dimension_semantics=("parallel",)),
    )(state_bf, next_bf, w1a, w1b, b1_f32, w2_p, b2_f32)

    # Strip batch/lane padding; return f32 like the PyTorch module.
    return out[:B, :A].astype(jnp.float32)


def init_params(key, state_size, action_size, fc1_units):
    """Deterministic init mirroring nn.Linear's default U(-1/sqrt(fan_in), +)."""
    k1, k2, k3, k4 = jax.random.split(key, 4)
    in1 = state_size * 2
    bound1 = 1.0 / jnp.sqrt(in1)
    bound2 = 1.0 / jnp.sqrt(fc1_units)
    w1 = jax.random.uniform(k1, (in1, fc1_units), jnp.float32, -bound1, bound1)
    b1 = jax.random.uniform(k2, (fc1_units,), jnp.float32, -bound1, bound1)
    w2 = jax.random.uniform(k3, (fc1_units, action_size), jnp.float32, -bound2, bound2)
    b2 = jax.random.uniform(k4, (action_size,), jnp.float32, -bound2, bound2)
    return w1, b1, w2, b2


def _reference(state, next_state, w1, b1, w2, b2):
    """Pure-JAX reference with matching bf16 operand/output rounding."""
    inp = jnp.concatenate([state, next_state], axis=1)
    inp_r = inp.astype(jnp.bfloat16).astype(jnp.float32)
    w1_r = w1.astype(jnp.bfloat16).astype(jnp.float32)
    w2_r = w2.astype(jnp.bfloat16).astype(jnp.float32)
    h = jnp.maximum(inp_r @ w1_r + b1, 0.0)
    o = h.astype(jnp.bfloat16).astype(jnp.float32) @ w2_r + b2
    return o.astype(jnp.bfloat16).astype(jnp.float32)


if __name__ == "__main__":
    state_size = 16
    action_size = 4
    fc1_units = 256

    key = jax.random.PRNGKey(0)
    k_s, k_ns, k_p = jax.random.split(key, 3)
    w1, b1, w2, b2 = init_params(k_p, state_size, action_size, fc1_units)

    # Case 1: small batch -> single grid step.
    batch = 8
    state = jax.random.normal(k_s, (batch, state_size), jnp.float32)
    next_state = jax.random.normal(k_ns, (batch, state_size), jnp.float32)
    out = jax.block_until_ready(
        inverse_model_forward(state, next_state, w1, b1, w2, b2))
    assert out.shape == (batch, action_size)
    ref = _reference(state, next_state, w1, b1, w2, b2)
    assert jnp.allclose(out, ref, atol=2e-2, rtol=2e-2), (
        f"case1 max abs err {jnp.max(jnp.abs(out - ref))}")

    # Case 2: batch with a remainder -> exercises padding + >=2 grid steps.
    batch2 = 40
    s2 = jax.random.normal(jax.random.PRNGKey(1), (batch2, state_size), jnp.float32)
    ns2 = jax.random.normal(jax.random.PRNGKey(2), (batch2, state_size), jnp.float32)
    out2 = jax.block_until_ready(
        inverse_model_forward(s2, ns2, w1, b1, w2, b2))
    assert out2.shape == (batch2, action_size)
    ref2 = _reference(s2, ns2, w1, b1, w2, b2)
    assert jnp.allclose(out2, ref2, atol=2e-2, rtol=2e-2), (
        f"case2 max abs err {jnp.max(jnp.abs(out2 - ref2))}")

    print("KERNEL_OK")
</pallas_src>

<mosaic_0001>
module attributes {stable_mosaic.version = 11 : i64} {
  func.func @_inverse_model_kernel(%arg0: i32, %arg1: memref<16x16xbf16, #tpu.memory_space<vmem>>, %arg2: memref<16x16xbf16, #tpu.memory_space<vmem>>, %arg3: memref<16x256xbf16, #tpu.memory_space<vmem>>, %arg4: memref<16x256xbf16, #tpu.memory_space<vmem>>, %arg5: memref<1x256xf32, #tpu.memory_space<vmem>>, %arg6: memref<256x128xbf16, #tpu.memory_space<vmem>>, %arg7: memref<1x128xf32, #tpu.memory_space<vmem>>, %arg8: memref<16x128xbf16, #tpu.memory_space<vmem>>) attributes {dimension_semantics = [#tpu.dimension_semantics<parallel>], iteration_bounds = array<i64: 1>, scalar_prefetch = 0 : i64, scratch_operands = 0 : i64, tpu.core_type = #tpu.core_type<tc>, window_params = [{transform_indices = @transform_0, window_bounds = array<i64: 16, 16>}, {transform_indices = @transform_1, window_bounds = array<i64: 16, 16>}, {pipeline_mode = #tpu.pipeline_mode<synchronous>, transform_indices = @transform_2, window_bounds = array<i64: 16, 256>}, {pipeline_mode = #tpu.pipeline_mode<synchronous>, transform_indices = @transform_3, window_bounds = array<i64: 16, 256>}, {pipeline_mode = #tpu.pipeline_mode<synchronous>, transform_indices = @transform_4, window_bounds = array<i64: 1, 256>}, {pipeline_mode = #tpu.pipeline_mode<synchronous>, transform_indices = @transform_5, window_bounds = array<i64: 256, 128>}, {pipeline_mode = #tpu.pipeline_mode<synchronous>, transform_indices = @transform_6, window_bounds = array<i64: 1, 128>}, {transform_indices = @transform_7, window_bounds = array<i64: 16, 128>}]} {
    %c0 = arith.constant 0 : index
    %c0_0 = arith.constant 0 : index
    %0 = vector.load %arg1[%c0, %c0_0] : memref<16x16xbf16, #tpu.memory_space<vmem>>, vector<16x16xbf16>
    %c0_1 = arith.constant 0 : index
    %c0_2 = arith.constant 0 : index
    %1 = vector.load %arg3[%c0_1, %c0_2] : memref<16x256xbf16, #tpu.memory_space<vmem>>, vector<16x256xbf16>
    %cst = arith.constant dense<0.000000e+00> : vector<16x256xf32>
    %2 = tpu.matmul %0, %1, %cst {dimension_numbers = #tpu.dot_dimension_numbers<[1], [0], [0], [1], [0, 0, 1, 1], [], []>} : vector<16x16xbf16>, vector<16x256xbf16>, vector<16x256xf32> -> vector<16x256xf32>
    %c0_3 = arith.constant 0 : index
    %c0_4 = arith.constant 0 : index
    %3 = vector.load %arg2[%c0_3, %c0_4] : memref<16x16xbf16, #tpu.memory_space<vmem>>, vector<16x16xbf16>
    %c0_5 = arith.constant 0 : index
    %c0_6 = arith.constant 0 : index
    %4 = vector.load %arg4[%c0_5, %c0_6] : memref<16x256xbf16, #tpu.memory_space<vmem>>, vector<16x256xbf16>
    %cst_7 = arith.constant dense<0.000000e+00> : vector<16x256xf32>
    %5 = tpu.matmul %3, %4, %cst_7 {dimension_numbers = #tpu.dot_dimension_numbers<[1], [0], [0], [1], [0, 0, 1, 1], [], []>} : vector<16x16xbf16>, vector<16x256xbf16>, vector<16x256xf32> -> vector<16x256xf32>
    %6 = arith.addf %2, %5 : vector<16x256xf32>
    %c0_8 = arith.constant 0 : index
    %c0_9 = arith.constant 0 : index
    %7 = vector.load %arg5[%c0_8, %c0_9] : memref<1x256xf32, #tpu.memory_space<vmem>>, vector<1x256xf32>
    %8 = vector.broadcast %7 : vector<1x256xf32> to vector<16x256xf32>
    %9 = arith.addf %6, %8 : vector<16x256xf32>
    %cst_10 = arith.constant 0.000000e+00 : f32
    %10 = vector.broadcast %cst_10 : f32 to vector<16x256xf32>
    %11 = arith.maximumf %9, %10 : vector<16x256xf32>
    %12 = arith.truncf %11 : vector<16x256xf32> to vector<16x256xbf16>
    %c0_11 = arith.constant 0 : index
    %c0_12 = arith.constant 0 : index
    %13 = vector.load %arg6[%c0_11, %c0_12] : memref<256x128xbf16, #tpu.memory_space<vmem>>, vector<256x128xbf16>
    %cst_13 = arith.constant dense<0.000000e+00> : vector<16x128xf32>
    %14 = tpu.matmul %12, %13, %cst_13 {dimension_numbers = #tpu.dot_dimension_numbers<[1], [0], [0], [1], [0, 0, 1, 1], [], []>} : vector<16x256xbf16>, vector<256x128xbf16>, vector<16x128xf32> -> vector<16x128xf32>
    %c0_14 = arith.constant 0 : index
    %c0_15 = arith.constant 0 : index
    %15 = vector.load %arg7[%c0_14, %c0_15] : memref<1x128xf32, #tpu.memory_space<vmem>>, vector<1x128xf32>
    %16 = vector.broadcast %15 : vector<1x128xf32> to vector<16x128xf32>
    %17 = arith.addf %14, %16 : vector<16x128xf32>
    %18 = arith.truncf %17 : vector<16x128xf32> to vector<16x128xbf16>
    %c0_16 = arith.constant 0 : index
    %c0_17 = arith.constant 0 : index
    %19 = vector.load %arg8[%c0_16, %c0_17] : memref<16x128xbf16, #tpu.memory_space<vmem>>, vector<16x128xbf16>
    tpu.vector_store %arg8[%c0_16, %c0_17], %18 {strides = array<i32>} : memref<16x128xbf16, #tpu.memory_space<vmem>>, vector<16x128xbf16>,
    return
  }
  func.func @transform_0(%arg0: i32) -> (i32, i32) {
    %c0_i32 = arith.constant 0 : i32
    %c0_i32_0 = arith.constant 0 : i32
    return %arg0, %c0_i32 : i32, i32
  }
  func.func @transform_1(%arg0: i32) -> (i32, i32) {
    %c0_i32 = arith.constant 0 : i32
    %c0_i32_0 = arith.constant 0 : i32
    return %arg0, %c0_i32 : i32, i32
  }
  func.func @transform_2(%arg0: i32) -> (i32, i32) {
    %c0_i32 = arith.constant 0 : i32
    %c0_i32_0 = arith.constant 0 : i32
    %c0_i32_1 = arith.constant 0 : i32
    return %c0_i32, %c0_i32_0 : i32, i32
  }
  func.func @transform_3(%arg0: i32) -> (i32, i32) {
    %c0_i32 = arith.constant 0 : i32
    %c0_i32_0 = arith.constant 0 : i32
    %c0_i32_1 = arith.constant 0 : i32
    return %c0_i32, %c0_i32_0 : i32, i32
  }
  func.func @transform_4(%arg0: i32) -> (i32, i32) {
    %c0_i32 = arith.constant 0 : i32
    %c0_i32_0 = arith.constant 0 : i32
    %c0_i32_1 = arith.constant 0 : i32
    return %c0_i32, %c0_i32_0 : i32, i32
  }
  func.func @transform_5(%arg0: i32) -> (i32, i32) {
    %c0_i32 = arith.constant 0 : i32
    %c0_i32_0 = arith.constant 0 : i32
    %c0_i32_1 = arith.constant 0 : i32
    return %c0_i32, %c0_i32_0 : i32, i32
  }
  func.func @transform_6(%arg0: i32) -> (i32, i32) {
    %c0_i32 = arith.constant 0 : i32
    %c0_i32_0 = arith.constant 0 : i32
    %c0_i32_1 = arith.constant 0 : i32
    return %c0_i32, %c0_i32_0 : i32, i32
  }
  func.func @transform_7(%arg0: i32) -> (i32, i32) {
    %c0_i32 = arith.constant 0 : i32
    %c0_i32_0 = arith.constant 0 : i32
    return %arg0, %c0_i32 : i32, i32
  }
}

</mosaic_0001>

<bundles_post_ra>
// kernel: tpu_custom_call.1
= control target key start
LH: loop header
LB: loop body
LE: loop exit
PB: predicated region body
PF: predicated region fallthrough
CT: control target
= control target key end

     0   :  { %12 = vsyncpa [#allocation3], 0  ;;  %s762_s0 = inlined_call_operand.hbm [shape: bf16[16,16], index: 0, kind: input, shape index: {}]   ;;  %s763_s1 = inlined_call_operand.hbm [shape: bf16[16,16], index: 1, kind: input, shape index: {}]   ;;  %s764_s2 = inlined_call_operand.hbm [shape: bf16[16,256], index: 2, kind: input, shape index: {}]   ;;  %s765_s3 = inlined_call_operand.hbm [shape: bf16[16,256], index: 3, kind: input, shape index: {}]   ;;  %s766_s4 = inlined_call_operand.vmem [shape: f32[1,256], index: 4, kind: input, shape index: {}]   ;;  %s767_s5 = inlined_call_operand.hbm [shape: bf16[256,128], index: 5, kind: input, shape index: {}]   ;;  %s768_s6 = inlined_call_operand.vmem [shape: f32[1,128], index: 6, kind: input, shape index: {}]   ;;  %s769_s7 = inlined_call_operand.hbm [shape: bf16[16,128], index: 7, kind: output, shape index: {}]  }
   0x1   :  { %13 = vsyncpa [#allocation6], 0 }
   0x2   :  { %14 = vsyncpa [#allocation9], 0 }
   0x3   :  { %15 = vsyncpa [#allocation4], 0  ;;  %s673_s24 = smov [#allocation5]  }
   0x4   :  { %s33_s25 = sshll.u32 %s673_s24, 4  ;;  %s34_s25 = int_to_ptr.vmem [resolvable:$true] %s33_s25 }
   0x5   :  { %s553_s26 = scalar_lea.vmem %s34_s25, 128  ;;  %p558_p1 = scmp.lt.s32.totalorder %s34_s25, %s34_s25 }
   0x6   :  { %p554_p0 = scmp.ne.s32.totalorder %s34_s25, %s553_s26  ;;  %p559_p2 = scmp.lt.s32.totalorder %s553_s26, %s553_s26 }
   0x8   :  { %p560_p3 = por %p559_p2, %p558_p1 }
   0xa   :  { %p561_p4 = pnand %p560_p3, %p554_p0 }
   0xc   :  { %564 = shalt.err (!%p561_p4)
}
   0xd   :  { %s674_s27 = smov 64   ;;  %s675_s28 = smov 4  }
   0xe   :  { %39 = dma.hbm_to_vmem [thread:$0]  %s763_s1, 128, %s34_s25, [#allocation6], %s674_s27, %s674_s27, %s675_s28  }
   0xf   :  { %s676_s8 = smov [#allocation8]   ;;  %s677_s10 = smov [#allocation2]  }
  0x10   :  { %s57_s9 = sshll.u32 %s676_s8, 4  ;;  %s21_s11 = sshll.u32 %s677_s10, 4  ;;  %s58_s9 = int_to_ptr.vmem [resolvable:$true] %s57_s9  ;;  %s22_s11 = int_to_ptr.vmem [resolvable:$true] %s21_s11 }
  0x11   :  { %s573_s12 = scalar_lea.vmem %s58_s9, 256  ;;  %p578_p6 = scmp.lt.s32.totalorder %s58_s9, %s58_s9 }
  0x12   :  { %p574_p5 = scmp.ne.s32.totalorder %s58_s9, %s573_s12  ;;  %p579_p7 = scmp.lt.s32.totalorder %s573_s12, %s573_s12 }
  0x14   :  { %p580_p8 = por %p579_p7, %p578_p6 }
  0x16   :  { %p581_p9 = pnand %p580_p8, %p574_p5 }
  0x18   :  { %584 = shalt.err (!%p581_p9)
}
  0x19   :  { %s678_s13 = smov 128   ;;  %s679_s14 = smov 8  }
  0x1a   :  { %63 = dma.hbm_to_vmem [thread:$0]  %s765_s3, 256, %s58_s9, [#allocation9], %s678_s13, %s678_s13, %s679_s14  }
  0x1b   :  { %s593_s1 = scalar_lea.vmem %s22_s11, 128  ;;  %p598_p11 = scmp.lt.s32.totalorder %s22_s11, %s22_s11 }
  0x1c   :  { %p594_p10 = scmp.ne.s32.totalorder %s22_s11, %s593_s1  ;;  %p599_p12 = scmp.lt.s32.totalorder %s593_s1, %s593_s1 }
  0x1e   :  { %p600_p13 = por %p599_p12, %p598_p11 }
  0x20   :  { %p601_p0 = pnand %p600_p13, %p594_p10 }
  0x22   :  { %604 = shalt.err (!%p601_p0)
}
  0x23   :  { %27 = dma.hbm_to_vmem [thread:$0]  %s762_s0, 128, %s22_s11, [#allocation3], %s674_s27, %s674_s27, %s675_s28  }
  0x24   :  { %s680_s19 = smov [#allocation7]   ;;  %s681_s21 = smov [#allocation10]  }
  0x25   :  { %s45_s20 = sshll.u32 %s680_s19, 4  ;;  %s71_s3 = sshll.u32 %s681_s21, 4  ;;  %s46_s20 = int_to_ptr.vmem [resolvable:$true] %s45_s20  ;;  %s72_s3 = int_to_ptr.vmem [resolvable:$true] %s71_s3 }
  0x26   :  { %s613_s22 = scalar_lea.vmem %s46_s20, 256  ;;  %p618_p2 = scmp.lt.s32.totalorder %s46_s20, %s46_s20 }
  0x27   :  { %p614_p1 = scmp.ne.s32.totalorder %s46_s20, %s613_s22  ;;  %p619_p3 = scmp.lt.s32.totalorder %s613_s22, %s613_s22 }
  0x29   :  { %p620_p4 = por %p619_p3, %p618_p2 }
  0x2b   :  { %p621_p5 = pnand %p620_p4, %p614_p1 }
  0x2d   :  { %624 = shalt.err (!%p621_p5)
}
  0x2e   :  { %51 = dma.hbm_to_vmem [thread:$0]  %s764_s2, 256, %s46_s20, [#allocation6], %s678_s13, %s678_s13, %s679_s14  }
  0x2f   :  { %s633_s25 = scalar_lea.vmem %s72_s3, 2048  ;;  %p638_p7 = scmp.lt.s32.totalorder %s72_s3, %s72_s3 }
  0x30   :  { %p634_p6 = scmp.ne.s32.totalorder %s72_s3, %s633_s25  ;;  %p639_p8 = scmp.lt.s32.totalorder %s633_s25, %s633_s25 }
  0x32   :  { %p640_p9 = por %p639_p8, %p638_p7 }
  0x34   :  { %p641_p10 = pnand %p640_p9, %p634_p6 }
  0x36   :  { %644 = shalt.err (!%p641_p10)
}
  0x37   :  { %77 = dma.hbm_to_vmem [thread:$0]  %s767_s5, 2048, %s72_s3, [#allocation9], %s674_s27, %s674_s27, %s675_s28  }
  0x38   :  { %665 = dma.done.wait [#allocation3], 128  }
  0x39   :  { %666 = vsyncadd [#allocation3], 4294967168 }
  0x3a   :  { %667 = dma.done.wait [#allocation6], 384  }
  0x3b   :  { %668 = vsyncadd [#allocation6], 4294966912 }
  0x3c   :  { %669 = dma.done.wait [#allocation9], 2304  }
  0x3d   :  { %670 = vsyncadd [#allocation9], 4294964992  ;;  %v682_v0 = vmov 0   ;;  %v521_v1 = vld [vmem:[#allocation8 + $0x4] ss:$8 sps:$4 sm:$0xff]   ;;  %vm119_vm0 = vcmask 130048   ;;  %v229_v24 = vlaneseq }
  0x3e   :  { %155 = vmatprep.mubr.bf16.mxu1 %v682_v0  ;;  %v523_v2 = vld [vmem:[#allocation8] ss:$8 sps:$4 sm:$0xff]   ;;  %137 = vmatprep.subr.bf16.mxu1 %v521_v1  ;;  %v525_v4 = vld [vmem:[#allocation7] ss:$8 sps:$4 sm:$0xff]   ;;  %v527_v5 = vld [vmem:[#allocation7 + $0x4] ss:$8 sps:$4 sm:$0xff]  }
  0x3f   :  { %v524_v3 = vld [vmem:[#allocation5] sm:$0xff]   ;;  %138 = vmatpush1.bf16.msra.mxu1 %v523_v2  ;;  %v531_v8 = vld [vmem:[#allocation10 + $0x70] sm:$0xff]   ;;  %v533_v11 = vld [vmem:[#allocation10 + $0x68] sm:$0xff]   ;;  %v230_v27 = vshrl.u32 %v229_v24, 7  ;;  %s683_s30 = smov [#allocation11]  }
  0x40   :  { %198 = vmatprep.subr.bf16.mxu1 %v527_v5  ;;  %v529_v6 = vld [vmem:[#allocation10 + $0x78] sm:$0xff]   ;;  %v528_v9 = vld [vmem:[#allocation2] sm:$0xff]   ;;  %v534_v12 = vld [vmem:[#allocation10 + $0x28] sm:$0xff]   ;;  %s440_s8 = sshll.u32 %s683_s30, 4  ;;  %s441_s8 = int_to_ptr.vmem [resolvable:$true] %s440_s8 }
  0x41   :  { %v530_v7 = vld [vmem:[#allocation10 + $0x38] sm:$0xff]   ;;  %488 = vmatprep.subr.bf16.mxu0 %v529_v6  ;;  %v532_v10 = vld [vmem:[#allocation10 + $0x30] sm:$0xff]   ;;  %v535_v13 = vld [vmem:[#allocation10 + $0x60] sm:$0xff]   ;;  %v235_v29 = vsub.s32 1, %v230_v27  ;;  %v231_v31 = vsub.s32 0, %v230_v27  ;;  %s645_s9 = scalar_lea.vmem %s441_s8, 128  ;;  %p650_p12 = scmp.lt.s32.totalorder %s441_s8, %s441_s8 }
  0x42   :  { %457 = vmatmul.mubr.msk.bf16.vlgmr.msra.gmra.mxu1 %vm119_vm0, %v524_v3  ;;  %489 = vmatpush3.bf16.msra.mxu0 %v530_v7  ;;  %v536_v14 = vld [vmem:[#allocation10 + $0x20] sm:$0xff]   ;;  %v537_v15 = vld [vmem:[#allocation10 + $0x58] sm:$0xff]   ;;  %v539_v17 = vld [vmem:[#allocation10 + $0x50] sm:$0xff]   ;;  %p646_p11 = scmp.ne.s32.totalorder %s441_s8, %s645_s9  ;;  %p651_p13 = scmp.lt.s32.totalorder %s645_s9, %s645_s9 }
  0x43   :  { %199 = vmatpush1.bf16.msra.mxu1 %v525_v4  ;;  %216 = vmatprep.mubr.bf16.mxu1 %v682_v0  ;;  %v538_v16 = vld [vmem:[#allocation10 + $0x18] sm:$0xff]   ;;  %v540_v18 = vld [vmem:[#allocation10 + $0x10] sm:$0xff]   ;;  %v541_v19 = vld [vmem:[#allocation10 + $0x48] sm:$0xff]  }
  0x44   :  { %490 = vmatprep.subr.bf16.mxu0 %v531_v8  ;;  %v542_v20 = vld [vmem:[#allocation10 + $0x8] sm:$0xff]   ;;  %v543_v21 = vld [vmem:[#allocation10 + $0x40] sm:$0xff]   ;;  %v227_v32 = vld [vmem:[%s766_s4] sm:$0x3]  ;;  %p652_p0 = por %p651_p13, %p650_p12 }
  0x45   :  { %v544_v22 = vld [vmem:[#allocation10] sm:$0xff]   ;;  %v236_v35 = vrot.slane %v227_v32, %v235_v29  ;;  %v232_v37 = vrot.slane %v227_v32, %v231_v31  ;;  %v462_v56 = vld [vmem:[%s768_s6] ss:$0 sm:$0xff] }
  0x46   :  { %491 = vmatpush3.bf16.msra.mxu0 %v532_v10  ;;  %p653_p1 = pnand %p652_p0, %p646_p11 }
  0x47   :  { %492 = vmatprep.subr.bf16.mxu0 %v533_v11 }
  0x4a   :  { %461 = vmatmul.mubr.msk.bf16.vlgmr.msra.gmra.mxu1 %vm119_vm0, %v528_v9  ;;  %493 = vmatpush3.bf16.msra.mxu0 %v534_v12 }
  0x4b   :  { %494 = vmatprep.subr.bf16.mxu0 %v535_v13 }
  0x4e   :  { %495 = vmatpush3.bf16.msra.mxu0 %v536_v14 }
  0x4f   :  { %496 = vmatprep.subr.bf16.mxu0 %v537_v15 }
  0x52   :  { %497 = vmatpush3.bf16.msra.mxu0 %v538_v16 }
  0x53   :  { %498 = vmatprep.subr.bf16.mxu0 %v539_v17 }
  0x56   :  { %499 = vmatpush3.bf16.msra.mxu0 %v540_v18 }
  0x57   :  { %500 = vmatprep.subr.bf16.mxu0 %v541_v19 }
  0x5a   :  { %501 = vmatpush3.bf16.msra.mxu0 %v542_v20 }
  0x5b   :  { %502 = vmatprep.subr.bf16.mxu0 %v543_v21 }
  0x5e   :  { %503 = vmatpush3.bf16.msra.mxu0 %v544_v22 }
 0x102   :  { %v157_v23 = vpop.f32.mrf.mxu1 }
 0x104   :  { %v159_v25 = vpop.f32.mrf.mxu1 }
 0x106   :  { %v161_v26 = vpop.f32.mrf.mxu1 }
 0x108   :  { %v163_v28 = vpop.f32.mrf.mxu1 }
 0x10a   :  { %v218_v30 = vpop.f32.mrf.mxu1 }
 0x10b   :  { %v219_v36 = vadd.f32 %v218_v30, %v157_v23 }
 0x10c   :  { %v220_v33 = vpop.f32.mrf.mxu1 }
 0x10d   :  { %v221_v34 = vadd.f32 %v220_v33, %v159_v25  ;;  %v239_v44 = vadd.f32 %v232_v37, %v219_v36 }
 0x10e   :  { %v222_v38 = vpop.f32.mrf.mxu1 }
 0x10f   :  { %v223_v39 = vadd.f32 %v222_v38, %v161_v26  ;;  %v240_v43 = vadd.f32 %v236_v35, %v221_v34  ;;  %v243_v49 = vmax.f32 %v239_v44, 0.0 }
 0x110   :  { %v224_v40 = vpop.f32.mrf.mxu1 }
 0x111   :  { %v241_v41 = vadd.f32 %v232_v37, %v223_v39  ;;  %v225_v42 = vadd.f32 %v224_v40, %v163_v28  ;;  %v244_v47 = vmax.f32 %v240_v43, 0.0 }
 0x113   :  { %v242_v45 = vadd.f32 %v236_v35, %v225_v42  ;;  %v245_v46 = vmax.f32 %v241_v41, 0.0 }
 0x115   :  { %v246_v48 = vmax.f32 %v242_v45, 0.0  ;;  %v247_v51 = vpack.c.bf16 %v245_v46, %v243_v49 }
 0x117   :  { %v248_v50 = vpack.c.bf16 %v246_v48, %v244_v47 }
 0x119   :  { %416 = vmatprep.mubr.bf16.mxu0 %v248_v50 }
 0x11a   :  { %417 = vmatmul.mubr.bf16.vlgmr.msra.gmra.mxu0 %v247_v51 }
 0x1da   :  { %v504_v52 = vpop.f32.mrf.mxu0 }
 0x1dc   :  { %v505_v53 = vpop.f32.mrf.mxu0 }
 0x1dd   :  { %v506_v55 = vadd.f32 %v505_v53, %v504_v52 }
 0x1de   :  { %v507_v54 = vpop.f32.mrf.mxu0 }
 0x1df   :  { %v419_v59 = vadd.f32 %v506_v55, %v462_v56 }
 0x1e0   :  { %v508_v57 = vpop.f32.mrf.mxu0 }
 0x1e1   :  { %v509_v58 = vadd.f32 %v508_v57, %v507_v54 }
 0x1e3   :  { %v422_v60 = vadd.f32 %v509_v58, %v462_v56 }
 0x1e5   :  { %v486_v61 = vpack.c.bf16 %v422_v60, %v419_v59 }
 0x1e7   :  { %487 = vst [vmem:[#allocation11] sm:$0xff] %v486_v61  }
 0x1e8   :  { %656 = shalt.err (!%p653_p1)
}
 0x1e9   :  { %446 = dma.vmem_to_hbm [thread:$0]  %s441_s8, 128, %s769_s7, [#allocation4], %s674_s27, %s674_s27, %s675_s28  }
 0x1ea   :  { %671 = dma.done.wait [#allocation4], 128  }
 0x1eb   :  { %672 = vsyncadd [#allocation4], 4294967168 }
 0x1ec   :  { %450 = vsyncpa [#allocation3], 1 }
 0x1ed   :  { %451 = vsyncpa [#allocation6], 1 }
 0x1ee   :  { %452 = vsyncpa [#allocation9], 1 }
 0x1ef   :  { %453 = vsyncpa [#allocation4], 1 }

</bundles_post_ra>
